<compile_context>
chip_gen: v7x
topology: tpu7x:2x2x1
jax: 0.10.0
libtpu: 0.0.40
codegen_flags: <defaults>
</compile_context>

<pallas_src>
import functools
import math

import jax
import jax.numpy as jnp
from jax import lax
from jax.experimental import pallas as pl
from jax.experimental.pallas import tpu as pltpu


# --------------------------------- kernel -----------------------------------

def _glu_conv_kernel(x_ref, mask_ref, w_ref, b_ref, o_ref, *, cout, kw, pad):
    """conv1(x) * sigmoid(conv2(x)) on one lane-dense, row-aligned block.

    x_ref:    (Cin, P)          block of x, flattened spatial axis on lanes
    mask_ref: (kw, P)           per-tap 0/1 row-boundary masks
    w_ref:    (kw, 2*Cout, Cin) per-tap fused [conv1; conv2] weight matrices
    b_ref:    (2*Cout, 1)       fused biases (f32)
    o_ref:    (Cout, P)         gated output
    """
    x = x_ref[...]                                          # (Cin, P)
    P = x.shape[-1]

    # kw accumulated per-tap dots: y += W_k @ tap_k.  Taps are built with XLU
    # lane rotations; row-boundary columns are zeroed via a precomputed mask
    # (select rather than multiply so garbage in a partial tail block can
    # never propagate through 0 * NaN).
    y = None
    for k in range(kw):
        off = k - pad
        if off == 0:
            tap = x
        else:
            rolled = pltpu.roll(x, shift=(-off) % P, axis=1)
            tap = jnp.where(mask_ref[k:k + 1, :] != 0, rolled, 0.0)
        d = jnp.dot(w_ref[k], tap, preferred_element_type=jnp.float32)
        y = d if y is None else y + d
    y = y + b_ref[...]                                      # (2*Cout, P) f32

    lin = y[:cout, :]
    g = y[cout:, :]
    gate = pl.reciprocal(1.0 + jnp.exp(-g), approx=True)    # sigmoid on EUP
    o_ref[...] = (lin * gate).astype(o_ref.dtype)


# -------------------------------- wrapper ------------------------------------

def glu_conv2d(x, w1, b1, w2, b2, *, vmem_budget_bytes=24 * 1024 * 1024):
    """GluConv2d forward.  x: NCHW;  w*: (Cout, Cin, 1, kw);  b*: (Cout,)."""
    N, C, H, W = x.shape
    Cout, Cin, kh, kw = w1.shape
    assert (Cin, kh) == (C, 1) and w2.shape == w1.shape
    pad = kw // 2
    HW = H * W

    # Per-tap fused weights: (kw, 2*Cout, C); fused biases (2*Cout, 1).
    # W_k[o, c] = w[o, c, 0, k] so y[o, p] = sum_k W_k @ x[:, p + k - pad].
    w_fused = jnp.concatenate([w1[:, :, 0, :], w2[:, :, 0, :]], axis=0)
    w_taps = jnp.transpose(w_fused, (2, 0, 1)).astype(x.dtype)   # (kw, 2Cout, C)
    b_fused = jnp.concatenate([b1, b2], axis=0)[:, None].astype(jnp.float32)

    # ---- block sizing: VMEM-budgeted, row- and lane-aligned spatial blocks ----
    itemsize = jnp.dtype(x.dtype).itemsize
    # Live bytes per lane per step: x double-buffered + rolled-tap temp
    # + f32 accumulator/epilogue temps + output double-buffered.
    per_lane = itemsize * (3 * C + 2 * Cout) + 4 * 4 * Cout
    quantum = (W * 128) // math.gcd(W, 128)                 # lcm(W, 128)
    cap = max(1, vmem_budget_bytes // per_lane)
    pblock = min(HW, max(quantum, (cap // quantum) * quantum))
    # v7x megacore: prefer >= 2 grid steps so both TensorCores get work.
    if N * pl.cdiv(HW, pblock) < 2 and HW >= 2 * quantum:
        pblock = max(quantum, ((HW // 2) // quantum) * quantum)
    if pblock > HW:
        pblock = HW
    assert pblock % W == 0, "spatial blocks must be row-aligned"

    # Per-tap boundary masks (identical for every row-aligned block).
    col = jnp.tile(jnp.arange(W, dtype=jnp.int32), pblock // W)
    masks = jnp.stack(
        [((col + (k - pad) >= 0) & (col + (k - pad) < W)).astype(x.dtype)
         for k in range(kw)], axis=0)                       # (kw, pblock)

    x3 = x.reshape(N, C, HW)          # contiguous reshape: no relayout / copy
    grid = (N, pl.cdiv(HW, pblock))

    kernel = functools.partial(_glu_conv_kernel, cout=Cout, kw=kw, pad=pad)

    out3 = pl.pallas_call(
        kernel,
        out_shape=jax.ShapeDtypeStruct((N, Cout, HW), x.dtype),
        grid_spec=pltpu.PrefetchScalarGridSpec(
            num_scalar_prefetch=0,
            grid=grid,
            in_specs=[
                pl.BlockSpec((None, C, pblock), lambda n, j: (n, 0, j)),     # x
                pl.BlockSpec((kw, pblock), lambda n, j: (0, 0)),             # masks
                pl.BlockSpec((kw, 2 * Cout, C), lambda n, j: (0, 0, 0)),     # weights
                pl.BlockSpec((2 * Cout, 1), lambda n, j: (0, 0)),            # biases
            ],
            out_specs=pl.BlockSpec((None, Cout, pblock), lambda n, j: (n, 0, j)),
        ),
        compiler_params=pltpu.CompilerParams(
            dimension_semantics=("parallel", "parallel"),
            vmem_limit_bytes=32 * 1024 * 1024,
        ),
        cost_estimate=pl.CostEstimate(
            flops=2 * N * HW * C * (2 * Cout) * kw,
            transcendentals=N * HW * Cout,
            bytes_accessed=itemsize * (C + Cout) * N * HW
                           + itemsize * (w_taps.size + masks.size)
                           + 4 * b_fused.size,
        ),
    )(x3, masks, w_taps, b_fused)

    return out3.reshape(N, Cout, H, W)    # contiguous reshape: free


# ------------------------------ JAX reference ---------------------------------

def reference_glu_conv2d(x, w1, b1, w2, b2):
    def conv(x_nchw, w, b):
        kw = w.shape[-1]
        pad = kw // 2
        y = lax.conv_general_dilated(
            x_nchw, w, window_strides=(1, 1), padding=((0, 0), (pad, pad)),
            dimension_numbers=("NCHW", "OIHW", "NCHW"),
            precision=lax.Precision.HIGHEST)
        return y + b.reshape(1, -1, 1, 1)

    return conv(x, w1, b1) * jax.nn.sigmoid(conv(x, w2, b2))


# ----------------------------------- main --------------------------------------

if __name__ == "__main__":
    key = jax.random.PRNGKey(0)
    N, C, H, W = 2, 4, 16, 16
    Cout, kw = 4, 3

    k1, k2, k3, k4, kx = jax.random.split(key, 5)
    w1 = 0.1 * jax.random.normal(k1, (Cout, C, 1, kw), jnp.float32)
    b1 = 0.01 * jax.random.normal(k2, (Cout,), jnp.float32)
    w2 = 0.1 * jax.random.normal(k3, (Cout, C, 1, kw), jnp.float32)
    b2 = 0.01 * jax.random.normal(k4, (Cout,), jnp.float32)
    x = jax.random.normal(kx, (N, C, H, W), jnp.float32)

    y = jax.block_until_ready(glu_conv2d(x, w1, b1, w2, b2))
    assert y.shape == (N, Cout, H, W), y.shape

    y_ref = reference_glu_conv2d(x, w1, b1, w2, b2)
    if not bool(jnp.allclose(y, y_ref, atol=2e-3, rtol=2e-3)):
        raise AssertionError("Pallas kernel mismatch vs JAX reference")

    print("KERNEL_OK")
</pallas_src>

<mosaic_0001>
module attributes {stable_mosaic.version = 11 : i64} {
  func.func @_glu_conv_kernel(%arg0: i32, %arg1: i32, %arg2: memref<1x4x256xf32, #tpu.memory_space<vmem>>, %arg3: memref<3x256xf32, #tpu.memory_space<vmem>>, %arg4: memref<3x8x4xf32, #tpu.memory_space<vmem>>, %arg5: memref<8x1xf32, #tpu.memory_space<vmem>>, %arg6: memref<1x4x256xf32, #tpu.memory_space<vmem>>) attributes {dimension_semantics = [#tpu.dimension_semantics<parallel>, #tpu.dimension_semantics<parallel>], iteration_bounds = array<i64: 2, 1>, scalar_prefetch = 0 : i64, scratch_operands = 0 : i64, tpu.core_type = #tpu.core_type<tc>, window_params = [{transform_indices = @transform_0, window_bounds = array<i64: 1, 4, 256>}, {pipeline_mode = #tpu.pipeline_mode<synchronous>, transform_indices = @transform_1, window_bounds = array<i64: 3, 256>}, {pipeline_mode = #tpu.pipeline_mode<synchronous>, transform_indices = @transform_2, window_bounds = array<i64: 3, 8, 4>}, {pipeline_mode = #tpu.pipeline_mode<synchronous>, transform_indices = @transform_3, window_bounds = array<i64: 8, 1>}, {transform_indices = @transform_4, window_bounds = array<i64: 1, 4, 256>}]} {
    %c0 = arith.constant 0 : index
    %c0_0 = arith.constant 0 : index
    %c0_1 = arith.constant 0 : index
    %0 = vector.load %arg2[%c0, %c0_0, %c0_1] : memref<1x4x256xf32, #tpu.memory_space<vmem>>, vector<1x4x256xf32>
    %1 = vector.shape_cast %0 : vector<1x4x256xf32> to vector<4x256xf32>
    %c1_i32 = arith.constant 1 : i32
    %2 = tpu.dynamic_rotate %1 by %c1_i32 dim 1 : vector<4x256xf32>, i32 -> vector<4x256xf32>
    %c0_2 = arith.constant 0 : index
    %c0_3 = arith.constant 0 : index
    %3 = vector.load %arg3[%c0_2, %c0_3] : memref<3x256xf32, #tpu.memory_space<vmem>>, vector<1x256xf32>
    %cst = arith.constant 0.000000e+00 : f32
    %4 = vector.broadcast %cst : f32 to vector<1x256xf32>
    %5 = arith.cmpf one, %3, %4 : vector<1x256xf32>
    %cst_4 = arith.constant 0.000000e+00 : f32
    %6 = vector.shape_cast %5 : vector<1x256xi1> to vector<1x256xi1>
    %7 = vector.broadcast %6 : vector<1x256xi1> to vector<4x256xi1>
    %8 = vector.broadcast %cst_4 : f32 to vector<4x256xf32>
    %9 = arith.select %7, %2, %8 : vector<4x256xi1>, vector<4x256xf32>
    %c0_5 = arith.constant 0 : index
    %c0_6 = arith.constant 0 : index
    %c0_7 = arith.constant 0 : index
    %10 = vector.load %arg4[%c0_5, %c0_6, %c0_7] : memref<3x8x4xf32, #tpu.memory_space<vmem>>, vector<1x8x4xf32>
    %11 = vector.shape_cast %10 : vector<1x8x4xf32> to vector<8x4xf32>
    %cst_8 = arith.constant dense<0.000000e+00> : vector<8x256xf32>
    %12 = tpu.matmul %11, %9, %cst_8 {dimension_numbers = #tpu.dot_dimension_numbers<[1], [0], [0], [1], [0, 0, 1, 1], [], []>} : vector<8x4xf32>, vector<4x256xf32>, vector<8x256xf32> -> vector<8x256xf32>
    %c1 = arith.constant 1 : index
    %c0_9 = arith.constant 0 : index
    %c0_10 = arith.constant 0 : index
    %13 = vector.load %arg4[%c1, %c0_9, %c0_10] : memref<3x8x4xf32, #tpu.memory_space<vmem>>, vector<1x8x4xf32>
    %14 = vector.shape_cast %13 : vector<1x8x4xf32> to vector<8x4xf32>
    %cst_11 = arith.constant dense<0.000000e+00> : vector<8x256xf32>
    %15 = tpu.matmul %14, %1, %cst_11 {dimension_numbers = #tpu.dot_dimension_numbers<[1], [0], [0], [1], [0, 0, 1, 1], [], []>} : vector<8x4xf32>, vector<4x256xf32>, vector<8x256xf32> -> vector<8x256xf32>
    %16 = arith.addf %12, %15 : vector<8x256xf32>
    %c255_i32 = arith.constant 255 : i32
    %17 = tpu.dynamic_rotate %1 by %c255_i32 dim 1 : vector<4x256xf32>, i32 -> vector<4x256xf32>
    %c2 = arith.constant 2 : index
    %c0_12 = arith.constant 0 : index
    %18 = vector.load %arg3[%c2, %c0_12] : memref<3x256xf32, #tpu.memory_space<vmem>>, vector<1x256xf32>
    %cst_13 = arith.constant 0.000000e+00 : f32
    %19 = vector.broadcast %cst_13 : f32 to vector<1x256xf32>
    %20 = arith.cmpf one, %18, %19 : vector<1x256xf32>
    %cst_14 = arith.constant 0.000000e+00 : f32
    %21 = vector.shape_cast %20 : vector<1x256xi1> to vector<1x256xi1>
    %22 = vector.broadcast %21 : vector<1x256xi1> to vector<4x256xi1>
    %23 = vector.broadcast %cst_14 : f32 to vector<4x256xf32>
    %24 = arith.select %22, %17, %23 : vector<4x256xi1>, vector<4x256xf32>
    %c2_15 = arith.constant 2 : index
    %c0_16 = arith.constant 0 : index
    %c0_17 = arith.constant 0 : index
    %25 = vector.load %arg4[%c2_15, %c0_16, %c0_17] : memref<3x8x4xf32, #tpu.memory_space<vmem>>, vector<1x8x4xf32>
    %26 = vector.shape_cast %25 : vector<1x8x4xf32> to vector<8x4xf32>
    %cst_18 = arith.constant dense<0.000000e+00> : vector<8x256xf32>
    %27 = tpu.matmul %26, %24, %cst_18 {dimension_numbers = #tpu.dot_dimension_numbers<[1], [0], [0], [1], [0, 0, 1, 1], [], []>} : vector<8x4xf32>, vector<4x256xf32>, vector<8x256xf32> -> vector<8x256xf32>
    %28 = arith.addf %16, %27 : vector<8x256xf32>
    %c0_19 = arith.constant 0 : index
    %c0_20 = arith.constant 0 : index
    %29 = vector.load %arg5[%c0_19, %c0_20] : memref<8x1xf32, #tpu.memory_space<vmem>>, vector<8x1xf32>
    %30 = vector.broadcast %29 : vector<8x1xf32> to vector<8x256xf32>
    %31 = arith.addf %28, %30 : vector<8x256xf32>
    %32 = vector.extract_strided_slice %31 {offsets = [0, 0], sizes = [4, 256], strides = [1, 1]} : vector<8x256xf32> to vector<4x256xf32>
    %33 = vector.extract_strided_slice %31 {offsets = [4, 0], sizes = [4, 256], strides = [1, 1]} : vector<8x256xf32> to vector<4x256xf32>
    %cst_21 = arith.constant 0.000000e+00 : f32
    %34 = vector.broadcast %cst_21 : f32 to vector<4x256xf32>
    %35 = arith.subf %34, %33 : vector<4x256xf32>
    %36 = math.exp %35 : vector<4x256xf32>
    %cst_22 = arith.constant 1.000000e+00 : f32
    %37 = vector.broadcast %cst_22 : f32 to vector<4x256xf32>
    %38 = arith.addf %37, %36 : vector<4x256xf32>
    %39 = tpu.reciprocal %38 {approx = true} : vector<4x256xf32> -> vector<4x256xf32>
    %40 = arith.mulf %32, %39 : vector<4x256xf32>
    %c0_23 = arith.constant 0 : index
    %c0_24 = arith.constant 0 : index
    %c0_25 = arith.constant 0 : index
    %41 = vector.load %arg6[%c0_23, %c0_24, %c0_25] : memref<1x4x256xf32, #tpu.memory_space<vmem>>, vector<1x4x256xf32>
    %42 = vector.shape_cast %41 : vector<1x4x256xf32> to vector<4x256xf32>
    %43 = vector.shape_cast %40 : vector<4x256xf32> to vector<1x4x256xf32>
    tpu.vector_store %arg6[%c0_23, %c0_24, %c0_25], %43 {strides = array<i32>} : memref<1x4x256xf32, #tpu.memory_space<vmem>>, vector<1x4x256xf32>,
    return
  }
  func.func @transform_0(%arg0: i32, %arg1: i32) -> (i32, i32, i32) {
    %c0_i32 = arith.constant 0 : i32
    %c0_i32_0 = arith.constant 0 : i32
    return %arg0, %c0_i32, %arg1 : i32, i32, i32
  }
  func.func @transform_1(%arg0: i32, %arg1: i32) -> (i32, i32) {
    %c0_i32 = arith.constant 0 : i32
    %c0_i32_0 = arith.constant 0 : i32
    %c0_i32_1 = arith.constant 0 : i32
    return %c0_i32, %c0_i32_0 : i32, i32
  }
  func.func @transform_2(%arg0: i32, %arg1: i32) -> (i32, i32, i32) {
    %c0_i32 = arith.constant 0 : i32
    %c0_i32_0 = arith.constant 0 : i32
    %c0_i32_1 = arith.constant 0 : i32
    %c0_i32_2 = arith.constant 0 : i32
    return %c0_i32, %c0_i32_0, %c0_i32_1 : i32, i32, i32
  }
  func.func @transform_3(%arg0: i32, %arg1: i32) -> (i32, i32) {
    %c0_i32 = arith.constant 0 : i32
    %c0_i32_0 = arith.constant 0 : i32
    %c0_i32_1 = arith.constant 0 : i32
    return %c0_i32, %c0_i32_0 : i32, i32
  }
  func.func @transform_4(%arg0: i32, %arg1: i32) -> (i32, i32, i32) {
    %c0_i32 = arith.constant 0 : i32
    %c0_i32_0 = arith.constant 0 : i32
    return %arg0, %c0_i32, %arg1 : i32, i32, i32
  }
}

</mosaic_0001>

<bundles_post_ra>
// kernel: tpu_custom_call.1
= control target key start
LH: loop header
LB: loop body
LE: loop exit
PB: predicated region body
PF: predicated region fallthrough
CT: control target
= control target key end

     0   :  { %9 = vsyncpa [#allocation3], 0  ;;  %s998_s0 = inlined_call_operand.vmem [shape: f32[2,4,256], index: 0, kind: input, shape index: {}]   ;;  %s999_s1 = inlined_call_operand.vmem [shape: f32[3,256], index: 1, kind: input, shape index: {}]   ;;  %s1000_s2 = inlined_call_operand.vmem [shape: f32[3,8,4], index: 2, kind: input, shape index: {}]   ;;  %s1001_s3 = inlined_call_operand.vmem [shape: f32[8,1], index: 3, kind: input, shape index: {}]   ;;  %s1002_s4 = inlined_call_operand.hbm [shape: f32[2,4,256], index: 4, kind: output, shape index: {}]  }
   0x1   :  { %11 = vsyncpa [#allocation3 + $0x1], 0  ;;  %s859_s15 = smov 0   ;;  %s861_s16 = smov 0  }
   0x2   :  { %s863_s17 = smov 0   ;;  %s865_s18 = smov 0  }
   0x3   :  { %s867_s19 = smov 0   ;;  %s869_s20 = smov 0  }
   0x4 LB: > { %s649_s21 = sadd.s32 4294967295, %s827_s20   ;;  %s650_s22 = sadd.s32 4294967294, %s827_s20   ;;  %s827_s20 = sphi %s869_s20, %s17_s20   ;;  %s823_s19 = sphi %s867_s19, %s1009_s19   ;;  %s819_s18 = sphi %s865_s18, %s1008_s18   ;;  %s815_s17 = sphi %s863_s17, %s1007_s17   ;;  %s811_s16 = sphi %s861_s16, %s1006_s16   ;;  %s807_s15 = sphi %s859_s15, %s1005_s15  }
   0x5   : > { %s29_s23 = sadd.s32 1, %s823_s19  ;;  %s129_s24 = sadd.s32 1, %s815_s17 }
   0x6   : > { %p31_p0 = scmp.ge.s32.totalorder %s29_s23, 2  ;;  %p139_p1 = scmp.ne.s32.totalorder %s815_s17, %s811_s16 }
   0x7   : > { %p140_p2 = scmp.eq.s32.totalorder %s649_s21, 1  ;;  %p145_p3 = scmp.ne.s32.totalorder %s811_s16, %s807_s15 }
   0x8   : > { %s1011_s23 = smov (%p31_p0, %s29_s23), 0  ;;  %p146_p5 = scmp.eq.s32.totalorder %s650_s22, 1 }
   0x9   : > { %p899_p4 = por %p140_p2, %p139_p1  ;;  %s124_s26 = ssub.s32 %s823_s19, %s1011_s23 }
   0xa   : > { %p653_p6 = scmp.ge.s32.totalorder %s827_s20, 1  ;;  %p127_p7 = scmp.eq.s32.totalorder %s124_s26, 0 }
   0xb   : > { %p906_p8 = por %p146_p5, %p145_p3  ;;  %p186_p9 = scmp.lt.s32.totalorder %s827_s20, 3 }
   0xc   : > { %s912_s28 = scalar_select %p127_p7, %s815_s17, %s129_s24  }
   0xd   : > { %p187_p10 = pnand %p653_p6, %p186_p9 }
   0xe   : > { %p217_p11 = scmp.lt.s32.totalorder (!%p187_p10), %s819_s18, 1  ;;  %v829_v0 = vmov (!%p187_p10), 0   ;;  %v830_v1 = vmov (!%p187_p10), 0.0   ;;  %s831_s8 = smov (!%p187_p10), 127   ;;  %vm262_vm0 = vcmask (!%p187_p10), 1043456   ;;  %v657_v4 = vld [vmem:[%s1000_s2 + $0x8] sm:$0xff] (!%p187_p10)  ;;  %v235_v6 = vlaneseq (!%p187_p10) }
   0xf   : > { %190 = sbr.rel (%p187_p10) target bundleno = 423 (0x1a7), region = 36  ;;  %739 = vset.pattern.permute.xlu0 (!%p187_p10), %v829_v0  ;;  %411 = vmatprep.mubr.f32.mxu0 (!%p187_p10), %v830_v1  ;;  %s832_s9 = smov (!%p187_p10), 1   ;;  %vm258_vm1 = vcmask (!%p187_p10), 31744   ;;  %v525_v5 = vld [vmem:[%s1001_s3] sm:$0xff] (!%p187_p10)  ;;  %v665_v32 = vld [vmem:[%s1000_s2 + $0x10] sm:$0xff] (!%p187_p10) }
  0x10   : > { %331 = vmatprep.mubr.f32.mxu1 (!%p187_p10), %v830_v1  ;;  %v664_v7 = vld [vmem:[%s999_s1 + $0x2] ss:$4 sm:$0x3] (!%p187_p10)  ;;  %v240_v8 = vld [vmem:[%s999_s1] ss:$4 sm:$0x3] (!%p187_p10) }
  0x11   : > { %v244_v9 = vshrl.u32 (!%p187_p10), %v235_v6, 7  ;;  %vm427_vm2 = vcmp.ne.f32.partialorder (!%p187_p10), %v664_v7, 0.0  ;;  %vm241_vm3 = vcmp.ne.f32.partialorder (!%p187_p10), %v240_v8, 0.0  ;;  %v236_v14 = vand.u32 (!%p187_p10), 127, %v235_v6  ;;  %v255_v30 = vld [vmem:[%s1000_s2] sm:$0xff] (!%p187_p10)  ;;  %s213_s6 = sand.u32 (!%p187_p10), 1, %s811_s16  }
  0x12   : > { %v428_v12 = vsel (!%p187_p10), %vm427_vm2, 1, %v829_v0  ;;  %v242_v13 = vsel (!%p187_p10), %vm241_vm3, 1, %v829_v0  ;;  %s557_s14 = scalar_lea.sflag (!%p187_p10), [#allocation3], %s213_s6 }
  0x13   : > { %v245_v10 = vsub.s32 (!%p187_p10), 0, %v244_v9  ;;  %v249_v11 = vsub.s32 (!%p187_p10), 1, %v244_v9  ;;  %vm422_vm4 = vcmp.lt.s32.totalorder (!%p187_p10), %v236_v14, 127  ;;  %vm237_vm5 = vcmp.lt.s32.totalorder (!%p187_p10), %v236_v14, 1 }
  0x15   : > { %v436_v15 = vrot.slane (!%p187_p10), %v428_v12, %v249_v11  ;;  %v250_v16 = vrot.slane (!%p187_p10), %v242_v13, %v249_v11  ;;  %v246_v17 = vrot.slane (!%p187_p10), %v242_v13, %v245_v10  ;;  %v432_v20 = vrot.slane (!%p187_p10), %v428_v12, %v245_v10 }
  0x16   : > { %s218_s29 = scalar_select %p217_p11, %s819_s18, 1 }
  0x17   : > { %vm438_vm6 = vcmp.eq.s32.totalorder %v436_v15, 1  ;;  %vm252_vm7 = vcmp.eq.s32.totalorder %v250_v16, 1  ;;  %vm251_vm8 = vcmp.eq.s32.totalorder %v246_v17, 1  ;;  %vm437_vm9 = vcmp.eq.s32.totalorder %v432_v20, 1 }
  0x18   : > { %s674_s30 = sshll.u32 %s218_s29, 3 }
  0x19   : > { %s224_s7 = scalar_lea.vmem %s998_s0, %s674_s30 }
  0x1a   : > { %v227_v2 = vld [vmem:[%s224_s7] sm:$0xff]  ;;  %s654_s7 = sshll.u32 %s213_s6, 3 }
  0x1b   : > { %418 = vrot.lane.b32.xlu1 %v227_v2, %s831_s8  ;;  %231 = vrot.lane.b32.xlu0 %v227_v2, %s832_s9  ;;  %v229_v3 = vcombine.high %v227_v2, %v227_v2 }
  0x1d   : > { %658 = vmatprep.subr.msk.mxu1 %vm262_vm0, %v229_v3 }
  0x1e   : > { %659 = vmatpush1.msk.msra.mxu1 %vm262_vm0, %v227_v2 }
  0x1f   : > { %420 = vrot.lane.b32.xlu1 %v229_v3, %s831_s8  ;;  %233 = vrot.lane.b32.xlu0 %v229_v3, %s832_s9  ;;  %s675_s8 = sshll.u32 %s819_s18, 7  ;;  %s215_s9 = scalar_lea.vmem [#allocation2], %s654_s7 }
  0x20   : > { %660 = vmatmul.mubr.msk.f32.vlgmr.msra.gmra.mrb[0].mxu1 %vm258_vm1, %v657_v4  ;;  %s573_s10 = sshll.u32 %s215_s9, 4  ;;  %s951_s13 = scalar_lea.hbm %s1002_s4, %s675_s8  ;;  %s953_s10 = int_to_ptr.vmem [resolvable:$true] %s573_s10 }
  0x21   : > { %s749_s21 = scalar_lea.vmem %s953_s10, 128  ;;  %s833_s18 = smov [#allocation2]  }
  0x22   : > { %p750_p12 = scmp.ne.s32.totalorder %s953_s10, %s749_s21  ;;  %s753_s22 = sshll.u32 %s833_s18, 4  ;;  %s754_s22 = int_to_ptr.vmem [resolvable:$false] %s753_s22 }
  0x23   : > { %528 = vperm.xlu0 %739, %v525_v5   ;;  %s755_s24 = scalar_lea.vmem %s754_s22, 256  ;;  %p756_p1 = scmp.lt.s32.totalorder %s953_s10, %s754_s22 }
  0x24   : > { %p751_p13 = pnand %p750_p12, %p899_p4  ;;  %p757_p2 = scmp.lt.s32.totalorder %s755_s24, %s749_s21 }
  0x26   : > { %p752_p0 = pneg %p751_p13  ;;  %p758_p3 = por %p757_p2, %p756_p1 }
  0x28   : > { %p759_p5 = pnand %p758_p3, %p752_p0 }
  0x8d   : > { %v419_v18 = vpop.permute.xlu1 %418  ;;  %v232_v19 = vpop.permute.xlu0 %231 }
  0x91   : > { %v421_v21 = vpop.permute.xlu1 %420  ;;  %v234_v22 = vpop.permute.xlu0 %233 }
  0x92   : > { %v423_v23 = vsel %vm422_vm4, %v419_v18, %v421_v21  ;;  %v424_v24 = vsel %vm422_vm4, %v421_v21, %v419_v18  ;;  %v239_v25 = vsel %vm237_vm5, %v234_v22, %v232_v19  ;;  %v238_v26 = vsel %vm237_vm5, %v232_v19, %v234_v22 }
  0x93   : > { %v440_v27 = vsel %vm438_vm6, %v424_v24, 0.0  ;;  %v254_v28 = vsel %vm252_vm7, %v238_v26, 0.0  ;;  %v253_v29 = vsel %vm251_vm8, %v239_v25, 0.0  ;;  %v439_v31 = vsel %vm437_vm9, %v423_v23, 0.0 }
  0x94   : > { %661 = vmatprep.subr.msk.mxu0 %vm262_vm0, %v254_v28 }
  0x95   : > { %662 = vmatpush1.msk.msra.mxu0 %vm262_vm0, %v253_v29 }
  0x96   : > { %663 = vmatmul.mubr.msk.f32.vlgmr.msra.gmra.mrb[0].mxu0 %vm258_vm1, %v255_v30  ;;  %666 = vmatprep.subr.msk.mxu0 %vm262_vm0, %v440_v27 }
  0x97   : > { %667 = vmatpush1.msk.msra.mxu0 %vm262_vm0, %v439_v31  ;;  %516 = vmatprep.mubr.f32.mxu0 %v830_v1 }
  0x9e   : > { %668 = vmatmul.mubr.msk.f32.vlgmr.msra.gmra.mrb[0].mxu0 %vm258_vm1, %v665_v32 }
  0xa2   : > { %v529_v36 = vpop.permute.xlu0 %528 }
  0xf3   : > { %v333_v33 = vpop.f32.mrb[0].mxu1 }
  0xf4   : > { %v335_v34 = vpop.f32.mrb[1].mxu1 }
 0x171   : > { %v518_v35 = vpop.f32.mrb[0].mxu0 }
 0x172   : > { %v676_v37 = vadd.f32 %v518_v35, %v333_v33  ;;  %v520_v38 = vpop.f32.mrb[1].mxu0 }
 0x173   : > { %v677_v39 = vadd.f32 %v520_v38, %v335_v34 }
 0x174   : > { %v531_v40 = vadd.f32 %v676_v37, %v529_v36 }
 0x175   : > { %v532_v41 = vadd.f32 %v677_v39, %v529_v36 }
 0x176   : > { %v533_v42 = vsub.f32 0.0, %v531_v40 }
 0x177   : > { %v534_v43 = vsub.f32 0.0, %v532_v41 }
 0x178   : > { %v535_v44 = vmul.f32 1.442695, %v533_v42 }
 0x179   : > { %v537_v45 = vmul.f32 1.442695, %v534_v43 }
 0x17a   : > { %741 = vpow2.f32 %v535_v44 }
 0x17b   : > { %743 = vpow2.f32 %v537_v45 }
 0x184   : > { %v742_v46 = vpop.eup %741 }
 0x185   : > { %v744_v47 = vpop.eup %743  ;;  %v539_v48 = vadd.f32 1.0, %v742_v46 }
 0x186   : > { %v540_v49 = vadd.f32 1.0, %v744_v47 }
 0x187   : > { %745 = vrcp.f32 %v539_v48 }
 0x188   : > { %747 = vrcp.f32 %v540_v49 }
 0x191   : > { %v746_v50 = vpop.eup %745 }
 0x192   : > { %v748_v51 = vpop.eup %747  ;;  %v545_v52 = vrot.slane %v746_v50, 4 }
 0x193   : > { %v546_v53 = vrot.slane %v748_v51, 4 }
 0x194   : > { %v549_v54 = vmul.f32 %v545_v52, %v531_v40 }
 0x195   : > { %v550_v55 = vmul.f32 %v546_v53, %v532_v41 }
 0x197   : > { %v553_v56 = vcombine.low %v549_v54, %v550_v55 }
 0x199   : > { %555 = vst [vmem:[%s215_s9] sm:$0xff] %v553_v56 }
 0x19a   : > { %762 = shalt.err (!%p759_p5)
}
 0x19b   : > { %s763_s26 = scalar_lea.hbm %s951_s13, 128  ;;  %s767_s5 = scalar_lea.hbm %s1002_s4, 256 }
 0x19c   : > { %p764_p6 = scmp.ne.s32.totalorder %s951_s13, %s763_s26  ;;  %p768_p10 = scmp.lt.u32.totalorder %s951_s13, %s1002_s4 }
 0x19d   : > { %p769_p11 = scmp.lt.u32.totalorder %s767_s5, %s763_s26  ;;  %p771_p13 = scmp.lt.u32.totalorder %s763_s26, %s951_s13 }
 0x19e   : > { %p765_p7 = pnand %p764_p6, %p899_p4 }
 0x19f   : > { %p770_p12 = por %p769_p11, %p768_p10 }
 0x1a0   : > { %p766_p9 = pneg %p765_p7 }
 0x1a1   : > { %p772_p0 = por %p771_p13, %p770_p12 }
 0x1a3   : > { %p773_p1 = pnand %p772_p0, %p766_p9 }
 0x1a5   : > { %776 = shalt.err (!%p773_p1)
}
 0x1a6   : > { %680 = dma.vmem_to_hbm [thread:$0]  (%p899_p4), %s953_s10, 128, %s951_s13, %s557_s14  }
 0x1a7 PF: > { %p686_p2 = scmp.ge.s32.totalorder %s827_s20, 2  ;;  %s585_s8 = sand.u32 1, %s807_s15  }
 0x1a8   : > { %s586_s9 = scalar_lea.sflag [#allocation3], %s585_s8 }
 0x1a9   : > { %p683_p3 = pnand %p686_p2, %p906_p8 }
 0x1ab   : > { %802 = dma.done.wait (!%p683_p3), %s586_s9, 128  }
 0x1ac   : > { %804 = vsyncadd (!%p683_p3), %s586_s9, 4294967168  ;;  %s17_s20 = sadd.s32 1, %s827_s20   ;;  %s1005_s15 = smov %s811_s16 }
 0x1ad   : > { %p14_p5 = scmp.ge.s32.totalorder %s17_s20, 4   ;;  %s1006_s16 = smov %s815_s17 }
 0x1ae   : > { %s1007_s17 = smov %s912_s28  ;;  %s1008_s18 = smov %s823_s19 }
 0x1af   : > { %s1009_s19 = smov %s1011_s23  ;;  %16 = sbr.rel (!%p14_p5) target bundleno = 4 (0x4), region = 74 }
 0x1b6   :  { %591 = vsyncpa [#allocation3], 1 }
 0x1b7   :  { %593 = vsyncpa [#allocation3 + $0x1], 1 }

</bundles_post_ra>
